<compile_context>
chip_gen: v7x
topology: tpu7x:2x2x1
jax: 0.10.0
libtpu: 0.0.40
codegen_flags: <defaults>
</compile_context>

<pallas_src>
import functools
import math

import jax
import jax.numpy as jnp
from jax.experimental import pallas as pl
from jax.experimental.pallas import tpu as pltpu


def _round_up(n, m):
    return ((n + m - 1) // m) * m


# ----------------------------------------------------------------------------
# Kernel
# ----------------------------------------------------------------------------
def dueling_q_kernel(x_ref, w_ref, bc_ref, out_ref, *, s_pad, hidden,
                     compute_dtype):
    """One batch tile of the fused dueling-Q forward pass.

    w_ref rows:  [0:H)          fused fc_val|fc_adv weights
                 [H:2H)         fused block-diagonal head weights
                 [2H:2H+s_pad)  fc1 weights (feature dim zero-padded)
    bc_ref rows: 0 = b1, 1 = b_va, 2 = b_out, 3 = coefficient row c.
    """
    x = x_ref[...]                                      # [T, s_pad] f32

    w_va = w_ref[0:hidden, :]                           # [H, H]
    w_out = w_ref[hidden:2 * hidden, :]                 # [H, H]
    w1 = w_ref[2 * hidden:2 * hidden + s_pad, :]        # [s_pad, H]
    b1 = bc_ref[0:1, :]                                 # [1, H] f32
    b_va = bc_ref[1:2, :]
    b_out = bc_ref[2:3, :]
    coeff = bc_ref[3:4, :]

    # fc1 + ReLU (bf16 operands on the MXU by default, f32 accumulate).
    h = jnp.dot(x.astype(compute_dtype), w1,
                preferred_element_type=jnp.float32) + b1
    h = jnp.maximum(h, 0.0)

    # Fused value|advantage hidden layer + ReLU: one full-width matmul.
    va = jnp.dot(h.astype(compute_dtype), w_va,
                 preferred_element_type=jnp.float32) + b_va
    va = jnp.maximum(va, 0.0)

    # Fused heads: lanes [0:A) = advantage, lane A = value, rest zero.
    head = jnp.dot(va.astype(compute_dtype), w_out,
                   preferred_element_type=jnp.float32) + b_out

    # Q = head + (V - mean_a(A)) via ONE weighted cross-lane reduction.
    # Lanes >= action_dim of the stored tile are garbage; the wrapper MUST
    # keep its [:, :action_dim] slice.
    r = jnp.sum(head * coeff, axis=1, keepdims=True)    # [T, 1]
    out_ref[...] = (head + r).astype(out_ref.dtype)


# ----------------------------------------------------------------------------
# Wrapper
# ----------------------------------------------------------------------------
def dueling_q_forward(x, packed, *, state_dim, action_dim, hidden_dim=128,
                      tile_b=1024):
    """Fused dueling-Q forward. Returns [batch, action_dim] f32 Q-values."""
    w_slab, bc_slab = packed
    batch = x.shape[0]
    s_pad = _round_up(state_dim, 8)
    compute_dtype = w_slab.dtype   # bf16 by default (f32 accumulate in-kernel)

    # ---- batch tile selection -------------------------------------------
    if batch > tile_b:
        tile = tile_b                                   # large: TILE_B rows
    elif batch >= 64:
        tile = _round_up(pl.cdiv(batch, 2), 8)          # >=2 steps (v7x: 2 TCs)
    else:
        tile = _round_up(max(batch, 1), 8)              # small: single tile
    grid = (pl.cdiv(batch, tile),)

    # ---- input prep -------------------------------------------------------
    # Only materialize a padded copy of x when unavoidable (feature dim not
    # 8-aligned, or the single tile is larger than the batch).  Otherwise pass
    # x straight through and let Pallas handle the ragged last block; garbage
    # rows/lanes are discarded by the final slice.
    x = x.astype(jnp.float32)
    if state_dim != s_pad or batch < tile:
        rows = max(batch, tile)
        x_in = jnp.zeros((rows, s_pad), jnp.float32).at[:batch, :state_dim].set(x)
    else:
        x_in = x

    kernel = functools.partial(dueling_q_kernel, s_pad=s_pad,
                               hidden=hidden_dim, compute_dtype=compute_dtype)

    out = pl.pallas_call(
        kernel,
        out_shape=jax.ShapeDtypeStruct((x_in.shape[0], hidden_dim), jnp.float32),
        grid=grid,
        in_specs=[
            pl.BlockSpec((tile, s_pad), lambda i: (i, 0)),
            pl.BlockSpec(w_slab.shape, lambda i: (0, 0)),   # resident weights
            pl.BlockSpec(bc_slab.shape, lambda i: (0, 0)),  # resident bias/coeff
        ],
        out_specs=pl.BlockSpec((tile, hidden_dim), lambda i: (i, 0)),
        compiler_params=pltpu.CompilerParams(
            dimension_semantics=("parallel",)),
    )(x_in, w_slab, bc_slab)

    return out[:batch, :action_dim]


# ----------------------------------------------------------------------------
# Parameter construction / packing
# ----------------------------------------------------------------------------
def init_linear(key, in_features, out_features):
    """PyTorch nn.Linear-style init: U(-1/sqrt(fan_in), 1/sqrt(fan_in)).

    Weight is returned as [in, out] (transpose of PyTorch's [out, in]),
    bias as [1, out].
    """
    kw, kb = jax.random.split(key)
    bound = 1.0 / math.sqrt(in_features)
    w = jax.random.uniform(kw, (in_features, out_features),
                           minval=-bound, maxval=bound, dtype=jnp.float32)
    b = jax.random.uniform(kb, (1, out_features),
                           minval=-bound, maxval=bound, dtype=jnp.float32)
    return w, b


def make_params(key, state_dim, action_dim, hidden_dim=128):
    half = hidden_dim // 2
    k1, k2, k3, k4, k5 = jax.random.split(key, 5)
    w1, b1 = init_linear(k1, state_dim, hidden_dim)     # fc1
    wv, bv = init_linear(k2, hidden_dim, half)          # fc_val
    wvo, bvo = init_linear(k3, half, 1)                 # val_out
    wa, ba = init_linear(k4, hidden_dim, half)          # fc_adv
    wao, bao = init_linear(k5, half, action_dim)        # adv_out
    return (w1, b1, wv, bv, wvo, bvo, wa, ba, wao, bao)


def pack_params(params, state_dim, action_dim, hidden_dim=128,
                weight_dtype=jnp.bfloat16):
    """Pack the 10 tensors into one weight slab (weight_dtype) and one f32
    bias/coefficient slab."""
    (w1, b1, wv, bv, wvo, bvo, wa, ba, wao, bao) = params
    half = hidden_dim // 2
    assert action_dim + 1 <= hidden_dim
    s_pad = _round_up(state_dim, 8)

    # fc1, input dim zero-padded to a sublane multiple.
    w1_pad = jnp.zeros((s_pad, hidden_dim), jnp.float32).at[:state_dim, :].set(w1)

    # Fused value|advantage hidden layer: lanes [0:half)=val, [half:)=adv.
    w_va = jnp.concatenate([wv, wa], axis=1)            # [H, H]
    b_va = jnp.concatenate([bv, ba], axis=1)            # [1, H]

    # Fused heads (block diagonal): adv in lanes [0:A), value at lane A.
    w_out = jnp.zeros((hidden_dim, hidden_dim), jnp.float32)
    w_out = w_out.at[half:, 0:action_dim].set(wao)                  # adv stream
    w_out = w_out.at[:half, action_dim:action_dim + 1].set(wvo)     # val stream
    b_out = jnp.zeros((1, hidden_dim), jnp.float32)
    b_out = b_out.at[0, 0:action_dim].set(bao[0])
    b_out = b_out.at[0, action_dim].set(bvo[0, 0])

    # Coefficient row for the epilogue: sum(head*c) = V - mean_a(A).
    coeff = jnp.zeros((hidden_dim,), jnp.float32)
    coeff = coeff.at[:action_dim].set(-1.0 / action_dim)
    coeff = coeff.at[action_dim].set(1.0)

    # Order [w_va | w_out | w1] so every slice offset is 128-row aligned.
    w_slab = jnp.concatenate([w_va, w_out, w1_pad], axis=0).astype(weight_dtype)
    bc_slab = jnp.zeros((8, hidden_dim), jnp.float32)
    bc_slab = (bc_slab.at[0].set(b1[0]).at[1].set(b_va[0])
               .at[2].set(b_out[0]).at[3].set(coeff))
    return w_slab, bc_slab


def reference_forward(x, params):
    """Pure-JAX reference mirroring the PyTorch module."""
    (w1, b1, wv, bv, wvo, bvo, wa, ba, wao, bao) = params
    h = jax.nn.relu(x @ w1 + b1)
    val = jax.nn.relu(h @ wv + bv) @ wvo + bvo
    adv = jax.nn.relu(h @ wa + ba) @ wao + bao
    return val + adv - adv.mean(axis=1, keepdims=True)


# ----------------------------------------------------------------------------
# Demo / correctness check
# ----------------------------------------------------------------------------
if __name__ == "__main__":
    key = jax.random.PRNGKey(0)
    k_params, k_x, k_x2 = jax.random.split(key, 3)

    batch = 2
    state_dim = 8
    action_dim = 4
    hidden_dim = 128

    params = make_params(k_params, state_dim, action_dim, hidden_dim)
    packed_bf16 = pack_params(params, state_dim, action_dim, hidden_dim)  # default bf16
    packed_f32 = pack_params(params, state_dim, action_dim, hidden_dim,
                             weight_dtype=jnp.float32)

    # Small batch (single tile).
    x = jax.random.normal(k_x, (batch, state_dim), dtype=jnp.float32)
    ref = reference_forward(x, params)

    # f32-operand path: tight tolerance.
    out_f32 = jax.block_until_ready(dueling_q_forward(
        x, packed_f32, state_dim=state_dim, action_dim=action_dim,
        hidden_dim=hidden_dim))
    assert out_f32.shape == (batch, action_dim)
    assert jnp.allclose(out_f32, ref, atol=1e-3, rtol=1e-3), "f32 path mismatch"

    # Default bf16-operand path: looser tolerance.
    out_bf16 = jax.block_until_ready(dueling_q_forward(
        x, packed_bf16, state_dim=state_dim, action_dim=action_dim,
        hidden_dim=hidden_dim))
    assert out_bf16.shape == (batch, action_dim)
    assert jnp.allclose(out_bf16, ref, atol=5e-2, rtol=5e-2), "bf16 path mismatch"

    # Larger batch: exercises the >=2 grid-step split + ragged last block.
    big_batch = 300
    xb = jax.random.normal(k_x2, (big_batch, state_dim), dtype=jnp.float32)
    ref_b = reference_forward(xb, params)
    out_b = jax.block_until_ready(dueling_q_forward(
        xb, packed_bf16, state_dim=state_dim, action_dim=action_dim,
        hidden_dim=hidden_dim))
    assert out_b.shape == (big_batch, action_dim)
    assert jnp.allclose(out_b, ref_b, atol=5e-2, rtol=5e-2), "batched mismatch"

    print("KERNEL_OK")
</pallas_src>

<mosaic_0001>
module attributes {stable_mosaic.version = 11 : i64} {
  func.func @dueling_q_kernel(%arg0: i32, %arg1: memref<8x8xf32, #tpu.memory_space<vmem>>, %arg2: memref<264x128xf32, #tpu.memory_space<vmem>>, %arg3: memref<8x128xf32, #tpu.memory_space<vmem>>, %arg4: memref<8x128xf32, #tpu.memory_space<vmem>>) attributes {dimension_semantics = [#tpu.dimension_semantics<parallel>], iteration_bounds = array<i64: 1>, scalar_prefetch = 0 : i64, scratch_operands = 0 : i64, tpu.core_type = #tpu.core_type<tc>, window_params = [{transform_indices = @transform_0, window_bounds = array<i64: 8, 8>}, {pipeline_mode = #tpu.pipeline_mode<synchronous>, transform_indices = @transform_1, window_bounds = array<i64: 264, 128>}, {pipeline_mode = #tpu.pipeline_mode<synchronous>, transform_indices = @transform_2, window_bounds = array<i64: 8, 128>}, {transform_indices = @transform_3, window_bounds = array<i64: 8, 128>}]} {
    %c0 = arith.constant 0 : index
    %c0_0 = arith.constant 0 : index
    %0 = vector.load %arg1[%c0, %c0_0] : memref<8x8xf32, #tpu.memory_space<vmem>>, vector<8x8xf32>
    %c0_1 = arith.constant 0 : index
    %c0_2 = arith.constant 0 : index
    %1 = vector.load %arg2[%c0_1, %c0_2] : memref<264x128xf32, #tpu.memory_space<vmem>>, vector<128x128xf32>
    %c128 = arith.constant 128 : index
    %c0_3 = arith.constant 0 : index
    %2 = vector.load %arg2[%c128, %c0_3] : memref<264x128xf32, #tpu.memory_space<vmem>>, vector<128x128xf32>
    %c256 = arith.constant 256 : index
    %c0_4 = arith.constant 0 : index
    %3 = vector.load %arg2[%c256, %c0_4] : memref<264x128xf32, #tpu.memory_space<vmem>>, vector<8x128xf32>
    %c0_5 = arith.constant 0 : index
    %c0_6 = arith.constant 0 : index
    %4 = vector.load %arg3[%c0_5, %c0_6] : memref<8x128xf32, #tpu.memory_space<vmem>>, vector<1x128xf32>
    %c1 = arith.constant 1 : index
    %c0_7 = arith.constant 0 : index
    %5 = vector.load %arg3[%c1, %c0_7] : memref<8x128xf32, #tpu.memory_space<vmem>>, vector<1x128xf32>
    %c2 = arith.constant 2 : index
    %c0_8 = arith.constant 0 : index
    %6 = vector.load %arg3[%c2, %c0_8] : memref<8x128xf32, #tpu.memory_space<vmem>>, vector<1x128xf32>
    %c3 = arith.constant 3 : index
    %c0_9 = arith.constant 0 : index
    %7 = vector.load %arg3[%c3, %c0_9] : memref<8x128xf32, #tpu.memory_space<vmem>>, vector<1x128xf32>
    %cst = arith.constant dense<0.000000e+00> : vector<8x128xf32>
    %8 = tpu.matmul %0, %3, %cst {dimension_numbers = #tpu.dot_dimension_numbers<[1], [0], [0], [1], [0, 0, 1, 1], [], []>} : vector<8x8xf32>, vector<8x128xf32>, vector<8x128xf32> -> vector<8x128xf32>
    %9 = vector.broadcast %4 : vector<1x128xf32> to vector<8x128xf32>
    %10 = arith.addf %8, %9 : vector<8x128xf32>
    %cst_10 = arith.constant 0.000000e+00 : f32
    %11 = vector.broadcast %cst_10 : f32 to vector<8x128xf32>
    %12 = arith.maximumf %10, %11 : vector<8x128xf32>
    %cst_11 = arith.constant dense<0.000000e+00> : vector<8x128xf32>
    %13 = tpu.matmul %12, %1, %cst_11 {dimension_numbers = #tpu.dot_dimension_numbers<[1], [0], [0], [1], [0, 0, 1, 1], [], []>} : vector<8x128xf32>, vector<128x128xf32>, vector<8x128xf32> -> vector<8x128xf32>
    %14 = vector.broadcast %5 : vector<1x128xf32> to vector<8x128xf32>
    %15 = arith.addf %13, %14 : vector<8x128xf32>
    %cst_12 = arith.constant 0.000000e+00 : f32
    %16 = vector.broadcast %cst_12 : f32 to vector<8x128xf32>
    %17 = arith.maximumf %15, %16 : vector<8x128xf32>
    %cst_13 = arith.constant dense<0.000000e+00> : vector<8x128xf32>
    %18 = tpu.matmul %17, %2, %cst_13 {dimension_numbers = #tpu.dot_dimension_numbers<[1], [0], [0], [1], [0, 0, 1, 1], [], []>} : vector<8x128xf32>, vector<128x128xf32>, vector<8x128xf32> -> vector<8x128xf32>
    %19 = vector.broadcast %6 : vector<1x128xf32> to vector<8x128xf32>
    %20 = arith.addf %18, %19 : vector<8x128xf32>
    %21 = vector.broadcast %7 : vector<1x128xf32> to vector<8x128xf32>
    %22 = arith.mulf %20, %21 : vector<8x128xf32>
    %cst_14 = arith.constant dense<0.000000e+00> : vector<8xf32>
    %23 = vector.multi_reduction <add>, %22, %cst_14 [1] : vector<8x128xf32> to vector<8xf32>
    %24 = vector.shape_cast %23 : vector<8xf32> to vector<8x1xf32>
    %25 = vector.broadcast %24 : vector<8x1xf32> to vector<8x128xf32>
    %26 = arith.addf %20, %25 : vector<8x128xf32>
    %c0_15 = arith.constant 0 : index
    %c0_16 = arith.constant 0 : index
    %27 = vector.load %arg4[%c0_15, %c0_16] : memref<8x128xf32, #tpu.memory_space<vmem>>, vector<8x128xf32>
    tpu.vector_store %arg4[%c0_15, %c0_16], %26 {strides = array<i32>} : memref<8x128xf32, #tpu.memory_space<vmem>>, vector<8x128xf32>,
    return
  }
  func.func @transform_0(%arg0: i32) -> (i32, i32) {
    %c0_i32 = arith.constant 0 : i32
    %c0_i32_0 = arith.constant 0 : i32
    return %arg0, %c0_i32 : i32, i32
  }
  func.func @transform_1(%arg0: i32) -> (i32, i32) {
    %c0_i32 = arith.constant 0 : i32
    %c0_i32_0 = arith.constant 0 : i32
    %c0_i32_1 = arith.constant 0 : i32
    return %c0_i32, %c0_i32_0 : i32, i32
  }
  func.func @transform_2(%arg0: i32) -> (i32, i32) {
    %c0_i32 = arith.constant 0 : i32
    %c0_i32_0 = arith.constant 0 : i32
    %c0_i32_1 = arith.constant 0 : i32
    return %c0_i32, %c0_i32_0 : i32, i32
  }
  func.func @transform_3(%arg0: i32) -> (i32, i32) {
    %c0_i32 = arith.constant 0 : i32
    %c0_i32_0 = arith.constant 0 : i32
    return %arg0, %c0_i32 : i32, i32
  }
}

</mosaic_0001>

<bundles_post_ra>
// kernel: tpu_custom_call.1
= control target key start
LH: loop header
LB: loop body
LE: loop exit
PB: predicated region body
PF: predicated region fallthrough
CT: control target
= control target key end

     0   :  { %8 = vsyncpa [#allocation3], 0  ;;  %s706_s0 = inlined_call_operand.hbm [shape: f32[8,8], index: 0, kind: input, shape index: {}]   ;;  %s707_s1 = inlined_call_operand.hbm [shape: f32[264,128], index: 1, kind: input, shape index: {}]   ;;  %s708_s2 = inlined_call_operand.hbm [shape: f32[8,128], index: 2, kind: input, shape index: {}]   ;;  %s709_s3 = inlined_call_operand.hbm [shape: f32[8,128], index: 3, kind: output, shape index: {}]  }
   0x1   :  { %9 = vsyncpa [#allocation6], 0 }
   0x2   :  { %10 = vsyncpa [#allocation4], 0  ;;  %s610_s12 = smov [#allocation5]   ;;  %s516_s16 = scalar_lea.hbm %s707_s1, 4224 }
   0x3   :  { %s26_s13 = sshll.u32 %s610_s12, 4  ;;  %p517_p0 = scmp.ne.s32.totalorder %s707_s1, %s516_s16  ;;  %s27_s13 = int_to_ptr.vmem [resolvable:$true] %s26_s13 }
   0x4   :  { %p520_p1 = scmp.lt.u32.totalorder %s516_s16, %s707_s1 }
   0x6   :  { %p522_p2 = pnand %p520_p1, %p517_p0 }
   0x8   :  { %525 = shalt.err (!%p522_p2)
}
   0x9   :  { %s526_s21 = scalar_lea.vmem %s27_s13, 4224  ;;  %p531_p4 = scmp.lt.s32.totalorder %s27_s13, %s27_s13 }
   0xa   :  { %p527_p3 = scmp.ne.s32.totalorder %s27_s13, %s526_s21  ;;  %p532_p5 = scmp.lt.s32.totalorder %s526_s21, %s526_s21 }
   0xc   :  { %p533_p6 = por %p532_p5, %p531_p4 }
   0xe   :  { %p534_p7 = pnand %p533_p6, %p527_p3 }
  0x10   :  { %537 = shalt.err (!%p534_p7)
}
  0x11   :  { %s611_s22 = smov 128   ;;  %s612_s23 = smov 8  }
  0x12   :  { %32 = dma.hbm_to_vmem [thread:$0]  %s707_s1, 4224, %s27_s13, [#allocation6], %s611_s22, %s611_s22, %s612_s23  }
  0x13   :  { %s613_s26 = smov [#allocation2]   ;;  %s614_s28 = smov [#allocation7]  }
  0x14   :  { %s17_s27 = sshll.u32 %s613_s26, 4  ;;  %s39_s29 = sshll.u32 %s614_s28, 4  ;;  %s18_s27 = int_to_ptr.vmem [resolvable:$true] %s17_s27  ;;  %s40_s29 = int_to_ptr.vmem [resolvable:$true] %s39_s29 }
  0x15   :  { %s538_s5 = scalar_lea.hbm %s706_s0, 128 }
  0x16   :  { %p539_p8 = scmp.ne.s32.totalorder %s706_s0, %s538_s5  ;;  %p542_p9 = scmp.lt.u32.totalorder %s538_s5, %s706_s0 }
  0x18   :  { %p544_p10 = pnand %p542_p9, %p539_p8 }
  0x1a   :  { %547 = shalt.err (!%p544_p10)
}
  0x1b   :  { %s548_s1 = scalar_lea.vmem %s18_s27, 128  ;;  %p553_p12 = scmp.lt.s32.totalorder %s18_s27, %s18_s27 }
  0x1c   :  { %p549_p11 = scmp.ne.s32.totalorder %s18_s27, %s548_s1  ;;  %p554_p13 = scmp.lt.s32.totalorder %s548_s1, %s548_s1 }
  0x1e   :  { %p555_p0 = por %p554_p13, %p553_p12 }
  0x20   :  { %p556_p1 = pnand %p555_p0, %p549_p11 }
  0x22   :  { %559 = shalt.err (!%p556_p1)
}
  0x23   :  { %20 = dma.hbm_to_vmem [thread:$0]  %s706_s0, 128, %s18_s27, [#allocation3]  }
  0x24   :  { %s560_s14 = scalar_lea.hbm %s708_s2, 128 }
  0x25   :  { %p561_p2 = scmp.ne.s32.totalorder %s708_s2, %s560_s14  ;;  %p564_p3 = scmp.lt.u32.totalorder %s560_s14, %s708_s2 }
  0x27   :  { %p566_p4 = pnand %p564_p3, %p561_p2 }
  0x29   :  { %569 = shalt.err (!%p566_p4)
}
  0x2a   :  { %s570_s19 = scalar_lea.vmem %s40_s29, 128  ;;  %p575_p6 = scmp.lt.s32.totalorder %s40_s29, %s40_s29 }
  0x2b   :  { %p571_p5 = scmp.ne.s32.totalorder %s40_s29, %s570_s19  ;;  %p576_p7 = scmp.lt.s32.totalorder %s570_s19, %s570_s19 }
  0x2d   :  { %p577_p8 = por %p576_p7, %p575_p6 }
  0x2f   :  { %p578_p9 = pnand %p577_p8, %p571_p5 }
  0x31   :  { %581 = shalt.err (!%p578_p9)
}
  0x32   :  { %42 = dma.hbm_to_vmem [thread:$0]  %s708_s2, 128, %s40_s29, [#allocation6]  }
  0x33   :  { %604 = dma.done.wait [#allocation3], 128  }
  0x34   :  { %605 = vsyncadd [#allocation3], 4294967168 }
  0x35   :  { %606 = dma.done.wait [#allocation6], 4352  }
  0x36   :  { %607 = vsyncadd [#allocation6], 4294962944  ;;  %v615_v0 = vmov 0.0   ;;  %vm616_vm0 = vmmov 0   ;;  %v617_v1 = vmov 0.0|0.0   ;;  %vm94_vm1 = vcmask 64512  }
  0x37   :  { %384 = vmatprep.subr.mxu0 %v615_v0  ;;  %386 = vmatprep.mubr.msk.f32.mxu0 %vm616_vm0, %v615_v0  ;;  %v85_v2 = vld [vmem:[#allocation5 + $0x100] sm:$0xff]  ;;  %v52_v3 = vld [vmem:[#allocation2] sm:$0xff]  ;;  %v54_v5 = vld [vmem:[#allocation5 + $0x8] sm:$0xff]  ;;  %s618_s2 = smov [#allocation8]  }
  0x38   :  { %459 = vmatprep.subr.bf16.mxu1 %v617_v1  ;;  %421 = vmatprep.mubr.msk.f32.mxu1 %vm616_vm0, %v615_v0  ;;  %v53_v4 = vld [vmem:[#allocation5] sm:$0xff]  ;;  %v55_v6 = vld [vmem:[#allocation5 + $0x10] sm:$0xff]  ;;  %v56_v7 = vld [vmem:[#allocation5 + $0x18] sm:$0xff]  ;;  %s333_s21 = sshll.u32 %s618_s2, 4  ;;  %s334_s21 = int_to_ptr.vmem [resolvable:$true] %s333_s21 }
  0x39   :  { %385 = vmatpush3.msra.mxu0 %v85_v2  ;;  %v460_v8 = vpack.c.bf16 %v54_v5, %v53_v4  ;;  %v463_v9 = vpack.c.bf16 %v56_v7, %v55_v6  ;;  %v57_v10 = vld [vmem:[#allocation5 + $0x20] sm:$0xff]  ;;  %v58_v11 = vld [vmem:[#allocation5 + $0x28] sm:$0xff]  ;;  %v59_v13 = vld [vmem:[#allocation5 + $0x30] sm:$0xff]  ;;  %s582_s22 = scalar_lea.vmem %s334_s21, 128  ;;  %p587_p11 = scmp.lt.s32.totalorder %s334_s21, %s334_s21 }
  0x3a   :  { %387 = vmatmul.mubr.msk.f32.vlgmr.msra.gmra.mrb[0].mxu0 %vm94_vm1, %v52_v3  ;;  %483 = vmatprep.subr.bf16.mxu0 %v617_v1  ;;  %v466_v12 = vpack.c.bf16 %v58_v11, %v57_v10  ;;  %v60_v14 = vld [vmem:[#allocation5 + $0x38] sm:$0xff]  ;;  %v61_v16 = vld [vmem:[#allocation5 + $0x40] sm:$0xff]  ;;  %v62_v17 = vld [vmem:[#allocation5 + $0x48] sm:$0xff]  ;;  %p583_p10 = scmp.ne.s32.totalorder %s334_s21, %s582_s22  ;;  %p588_p12 = scmp.lt.s32.totalorder %s582_s22, %s582_s22 }
  0x3b   :  { %456 = vmatprep.mubr.msk.f32.mxu0 %vm616_vm0, %v615_v0  ;;  %461 = vmatpush3.bf16.msra.mxu1 %v460_v8  ;;  %v469_v15 = vpack.c.bf16 %v60_v14, %v59_v13  ;;  %v472_v18 = vpack.c.bf16 %v62_v17, %v61_v16  ;;  %v63_v19 = vld [vmem:[#allocation5 + $0x50] sm:$0xff]  ;;  %v64_v20 = vld [vmem:[#allocation5 + $0x58] sm:$0xff]  ;;  %v65_v22 = vld [vmem:[#allocation5 + $0x60] sm:$0xff] }
  0x3c   :  { %462 = vmatprep.subr.bf16.mxu1 %v617_v1  ;;  %v475_v21 = vpack.c.bf16 %v64_v20, %v63_v19  ;;  %v66_v23 = vld [vmem:[#allocation5 + $0x68] sm:$0xff]  ;;  %v67_v25 = vld [vmem:[#allocation5 + $0x70] sm:$0xff]  ;;  %v68_v26 = vld [vmem:[#allocation5 + $0x78] sm:$0xff]  ;;  %p589_p13 = por %p588_p12, %p587_p11 }
  0x3d   :  { %v478_v24 = vpack.c.bf16 %v66_v23, %v65_v22  ;;  %v481_v27 = vpack.c.bf16 %v68_v26, %v67_v25  ;;  %v69_v28 = vld [vmem:[#allocation5 + $0x80] sm:$0xff]  ;;  %v70_v29 = vld [vmem:[#allocation5 + $0x88] sm:$0xff]  ;;  %v71_v30 = vld [vmem:[#allocation5 + $0x90] sm:$0xff] }
  0x3e   :  { %v484_v31 = vpack.c.bf16 %v70_v29, %v69_v28  ;;  %v72_v32 = vld [vmem:[#allocation5 + $0x98] sm:$0xff]  ;;  %v73_v34 = vld [vmem:[#allocation5 + $0xa0] sm:$0xff]  ;;  %v74_v35 = vld [vmem:[#allocation5 + $0xa8] sm:$0xff]  ;;  %p590_p0 = pnand %p589_p13, %p583_p10 }
  0x3f   :  { %464 = vmatpush3.bf16.msra.mxu1 %v463_v9  ;;  %v487_v33 = vpack.c.bf16 %v72_v32, %v71_v30  ;;  %v490_v36 = vpack.c.bf16 %v74_v35, %v73_v34  ;;  %v75_v37 = vld [vmem:[#allocation5 + $0xb0] sm:$0xff]  ;;  %v76_v38 = vld [vmem:[#allocation5 + $0xb8] sm:$0xff]  ;;  %v77_v40 = vld [vmem:[#allocation5 + $0xc0] sm:$0xff] }
  0x40   :  { %465 = vmatprep.subr.bf16.mxu1 %v617_v1  ;;  %485 = vmatpush3.bf16.msra.mxu0 %v484_v31  ;;  %v493_v39 = vpack.c.bf16 %v76_v38, %v75_v37  ;;  %v78_v41 = vld [vmem:[#allocation5 + $0xc8] sm:$0xff]  ;;  %v79_v43 = vld [vmem:[#allocation5 + $0xd0] sm:$0xff]  ;;  %v80_v44 = vld [vmem:[#allocation5 + $0xd8] sm:$0xff] }
  0x41   :  { %486 = vmatprep.subr.bf16.mxu0 %v617_v1  ;;  %v496_v42 = vpack.c.bf16 %v78_v41, %v77_v40  ;;  %v499_v45 = vpack.c.bf16 %v80_v44, %v79_v43  ;;  %v81_v46 = vld [vmem:[#allocation5 + $0xe0] sm:$0xff]  ;;  %v82_v47 = vld [vmem:[#allocation5 + $0xe8] sm:$0xff]  ;;  %v83_v54 = vld [vmem:[#allocation5 + $0xf0] sm:$0xff] }
  0x42   :  { %v502_v48 = vpack.c.bf16 %v82_v47, %v81_v46  ;;  %v343_v49 = vld [vmem:[#allocation7] ss:$0 sm:$0xff]  ;;  %v84_v55 = vld [vmem:[#allocation5 + $0xf8] sm:$0xff]  ;;  %v345_v57 = vld [vmem:[#allocation7 + $0x1] ss:$0 sm:$0xff] }
  0x43   :  { %467 = vmatpush3.bf16.msra.mxu1 %v466_v12  ;;  %v505_v56 = vpack.c.bf16 %v84_v55, %v83_v54  ;;  %v346_v62 = vld [vmem:[#allocation7 + $0x2] ss:$0 sm:$0xff]  ;;  %v347_v0 = vld [vmem:[#allocation7 + $0x3] ss:$0 sm:$0xff] }
  0x44   :  { %468 = vmatprep.subr.bf16.mxu1 %v617_v1  ;;  %488 = vmatpush3.bf16.msra.mxu0 %v487_v33 }
  0x45   :  { %489 = vmatprep.subr.bf16.mxu0 %v617_v1 }
  0x47   :  { %470 = vmatpush3.bf16.msra.mxu1 %v469_v15 }
  0x48   :  { %471 = vmatprep.subr.bf16.mxu1 %v617_v1  ;;  %491 = vmatpush3.bf16.msra.mxu0 %v490_v36 }
  0x49   :  { %492 = vmatprep.subr.bf16.mxu0 %v617_v1 }
  0x4b   :  { %473 = vmatpush3.bf16.msra.mxu1 %v472_v18 }
  0x4c   :  { %474 = vmatprep.subr.bf16.mxu1 %v617_v1  ;;  %494 = vmatpush3.bf16.msra.mxu0 %v493_v39 }
  0x4d   :  { %495 = vmatprep.subr.bf16.mxu0 %v617_v1 }
  0x4f   :  { %476 = vmatpush3.bf16.msra.mxu1 %v475_v21 }
  0x50   :  { %477 = vmatprep.subr.bf16.mxu1 %v617_v1  ;;  %497 = vmatpush3.bf16.msra.mxu0 %v496_v42 }
  0x51   :  { %498 = vmatprep.subr.bf16.mxu0 %v617_v1 }
  0x53   :  { %479 = vmatpush3.bf16.msra.mxu1 %v478_v24 }
  0x54   :  { %480 = vmatprep.subr.bf16.mxu1 %v617_v1  ;;  %500 = vmatpush3.bf16.msra.mxu0 %v499_v45 }
  0x55   :  { %501 = vmatprep.subr.bf16.mxu0 %v617_v1 }
  0x57   :  { %482 = vmatpush3.bf16.msra.mxu1 %v481_v27 }
  0x58   :  { %503 = vmatpush3.bf16.msra.mxu0 %v502_v48 }
  0x59   :  { %504 = vmatprep.subr.bf16.mxu0 %v617_v1 }
  0x5c   :  { %506 = vmatpush3.bf16.msra.mxu0 %v505_v56 }
 0x10d   :  { %v164_v50 = vpop.f32.mrb[0].mxu0 }
 0x10e   :  { %v165_v51 = vadd.f32 %v343_v49, %v164_v50  ;;  %v388_v52 = vpop.f32.mrb[1].mxu0 }
 0x110   :  { %v168_v53 = vmax.f32 %v165_v51, 0.0 }
 0x112   :  { %422 = vmatmul.mubr.f32.vlgmr.msra.gmra.mrb[0].mxu1 %v168_v53 }
 0x1e5   :  { %v239_v58 = vpop.f32.mrb[0].mxu1 }
 0x1e6   :  { %v240_v59 = vadd.f32 %v345_v57, %v239_v58  ;;  %v423_v60 = vpop.f32.mrb[1].mxu1 }
 0x1e8   :  { %v243_v61 = vmax.f32 %v240_v59, 0.0 }
 0x1ea   :  { %457 = vmatmul.mubr.f32.vlgmr.msra.gmra.mrb[2].mxu0 %v243_v61 }
 0x2bd   :  { %v314_v63 = vpop.f32.mrb[2].mxu0 }
 0x2be   :  { %v315_v1 = vadd.f32 %v346_v62, %v314_v63  ;;  %v458_v2 = vpop.f32.mrb[3].mxu0 }
 0x2c0   :  { %v322_v3 = vmul.f32 %v347_v0, %v315_v1 }
 0x2c2   :  { %323 = vadd.xlane.f32.xlu0 %v322_v3 }
 0x34f   :  { %v324_v4 = vpop.xlane.xlu0 %323 }
 0x350   :  { %v325_v5 = vadd.f32 %v324_v4, %v315_v1 }
 0x352   :  { %326 = vst [vmem:[#allocation8] sm:$0xff] %v325_v5 }
 0x353   :  { %593 = shalt.err (!%p590_p0)
}
 0x354   :  { %s594_s25 = scalar_lea.hbm %s709_s3, 128 }
 0x355   :  { %p595_p1 = scmp.ne.s32.totalorder %s709_s3, %s594_s25  ;;  %p598_p2 = scmp.lt.u32.totalorder %s594_s25, %s709_s3 }
 0x357   :  { %p600_p3 = pnand %p598_p2, %p595_p1 }
 0x359   :  { %603 = shalt.err (!%p600_p3)
}
 0x35a   :  { %336 = dma.vmem_to_hbm [thread:$0]  %s334_s21, 128, %s709_s3, [#allocation4]  }
 0x35b   :  { %608 = dma.done.wait [#allocation4], 128  }
 0x35c   :  { %609 = vsyncadd [#allocation4], 4294967168 }
 0x35d   :  { %340 = vsyncpa [#allocation3], 1 }
 0x35e   :  { %341 = vsyncpa [#allocation6], 1 }
 0x35f   :  { %342 = vsyncpa [#allocation4], 1 }

</bundles_post_ra>
